<compile_context>
chip_gen: v7x
topology: tpu7x:2x2x1
jax: 0.10.0
libtpu: 0.0.40
codegen_flags: <defaults>
</compile_context>

<pallas_src>
import functools

import jax
import jax.numpy as jnp
from jax.experimental import pallas as pl
from jax.experimental.pallas import tpu as pltpu


def _round_up(x, m):
    return -(-x // m) * m


def _sublane_granularity(itemsize):
    # f32 -> 8 rows per VMEM tile, bf16 -> 16, int8/fp8 -> 32.
    return 8 * max(1, 4 // itemsize)


def _make_shuffle_kernel(bs, piece):
    """Kernel: x_ref (tr, bs, tw, bs*C) -> o_ref (tr, tw, bs*bs*C).

    The hb block-row index folds into the lane dimension at offset hb*bs*C,
    producing the required (hb, wb, c) channel ordering.  bs static lane-slice
    stores; everything else is DMA handled by the BlockSpec pipeline.
    """

    def kernel(x_ref, o_ref):
        for hb in range(bs):
            o_ref[:, :, hb * piece:(hb + 1) * piece] = x_ref[:, hb, :, :]

    return kernel


def _vmem_capacity_bytes():
    try:
        cap = getattr(pltpu.get_tpu_info(), "vmem_capacity_bytes", None)
        if cap:
            return int(cap)
    except Exception:
        pass
    return 64 * 1024 * 1024  # conservative fallback: v7x per-TensorCore VMEM


def _block_bytes(tr, tw, bs, C, itemsize):
    """Padded VMEM footprint of one (input + output) block pair."""
    bsC = bs * C
    sub = _round_up(tw, _sublane_granularity(itemsize))
    in_b = tr * bs * sub * _round_up(bsC, 128) * itemsize
    out_b = tr * sub * _round_up(bs * bsC, 128) * itemsize
    return in_b + out_b


def _pick_tiles(R, Wo, bs, C, itemsize, budget):
    """Largest row tile (and optional W tile) whose padded footprint fits."""
    per_row = _block_bytes(1, Wo, bs, C, itemsize)
    if per_row <= budget:
        tr = max(1, min(R, budget // per_row))
        if R >= 8:
            # Keep >= ~8 pipeline steps: prefetch/writeback overlap and v7x
            # megacore load balance on the leading "parallel" axis.
            tr = min(tr, _round_up(R, 8) // 8)
        return int(tr), int(Wo)
    # A single output row exceeds the budget: split W in sublane-granular
    # multiples so the second-minor block dim stays legal; a ragged last W
    # block is masked by Pallas.
    sub_g = _sublane_granularity(itemsize)
    tw = sub_g
    while tw * 2 < Wo and _block_bytes(1, tw * 2, bs, C, itemsize) <= budget:
        tw *= 2
    return 1, int(min(tw, Wo))


def pixel_shuffle_nhwc(x_nhwc, block_size):
    """Space-to-depth on NHWC: (B, H, W, C) -> (B, H//bs, W//bs, bs*bs*C).

    Transpose-free entry point (preferred when activations are already NHWC).
    """
    B, H, W, C = x_nhwc.shape
    bs = block_size
    assert H % bs == 0 and W % bs == 0, "spatial dims must be divisible by block_size"
    Ho, Wo = H // bs, W // bs
    bsC, D = bs * C, bs * bs * C
    R = B * Ho

    # Free, contiguous view (no data movement):
    #   x_view[b*Ho + ho, hb, wo, wb*C + c] = x_nhwc[b, ho*bs + hb, wo*bs + wb, c]
    x_view = x_nhwc.reshape(R, bs, Wo, bsC)

    itemsize = x_nhwc.dtype.itemsize
    # Per-chip VMEM budget: scoped limit ~ half of capacity (64 MiB on the
    # 128 MiB v5e/v6e, 32 MiB on the 64 MiB-per-TC v7x).  Pallas double-buffers
    # the blocks, so cap the per-step (in+out) padded footprint at a third.
    vmem_limit = int(min(_vmem_capacity_bytes() // 2, 64 * 1024 * 1024))
    budget = vmem_limit // 3
    tr, tw = _pick_tiles(R, Wo, bs, C, itemsize, budget)
    grid = (pl.cdiv(R, tr), pl.cdiv(Wo, tw))  # long parallel row axis leads

    out3 = pl.pallas_call(
        _make_shuffle_kernel(bs, bsC),
        out_shape=jax.ShapeDtypeStruct((R, Wo, D), x_nhwc.dtype),
        grid=grid,
        in_specs=[
            # Contiguous HBM read: all bs source rows of each row tile.
            pl.BlockSpec((tr, bs, tw, bsC), lambda r, w: (r, 0, w, 0)),
        ],
        # Contiguous HBM write: full (hb, wb, c) channel groups per output row.
        out_specs=pl.BlockSpec((tr, tw, D), lambda r, w: (r, w, 0)),
        compiler_params=pltpu.CompilerParams(
            dimension_semantics=("parallel", "parallel"),
            vmem_limit_bytes=vmem_limit,
        ),
        cost_estimate=pl.CostEstimate(
            flops=0,
            transcendentals=0,
            bytes_accessed=2 * x_nhwc.size * itemsize,
        ),
    )(x_view)

    # Free view back: (B*Ho, Wo, bs*bs*C) -> (B, Ho, Wo, bs*bs*C)
    return out3.reshape(B, Ho, Wo, D)


def pixel_shuffle(x_nchw, block_size):
    """PixelShuffle forward matching the PyTorch module: NCHW -> NCHW."""
    # TODO(synk): the two transposes below are boundary glue required by the
    # module's NCHW contract and each costs a full HBM read+write; fusing the
    # input NCHW->NHWC transpose into the kernel (channel-tile grid axis +
    # in-VMEM (C,W) transpose) would cut end-to-end traffic further.  NHWC
    # callers should use pixel_shuffle_nhwc() directly and skip both.
    x_nhwc = jnp.transpose(x_nchw, (0, 2, 3, 1))
    out_nhwc = pixel_shuffle_nhwc(x_nhwc, block_size)
    return jnp.transpose(out_nhwc, (0, 3, 1, 2))


def pixel_shuffle_ref(x_nchw, block_size):
    """Pure-JAX reference replicating the PyTorch module exactly."""
    B, C, H, W = x_nchw.shape
    bs = block_size
    xh = jnp.transpose(x_nchw, (0, 2, 3, 1))                 # NHWC
    xh = xh.reshape(B, H // bs, bs, W // bs, bs, C)          # (B, Ho, hb, Wo, wb, C)
    xh = jnp.transpose(xh, (0, 1, 3, 2, 4, 5))               # (B, Ho, Wo, hb, wb, C)
    xh = xh.reshape(B, H // bs, W // bs, bs * bs * C)
    return jnp.transpose(xh, (0, 3, 1, 2))                   # NCHW


def _check(B, C, H, W, bs, dtype, key):
    x = jax.random.normal(key, (B, C, H, W)).astype(dtype)
    fn = jax.jit(functools.partial(pixel_shuffle, block_size=bs))
    out = jax.block_until_ready(fn(x))
    ref = pixel_shuffle_ref(x, bs)
    assert out.shape == (B, C * bs * bs, H // bs, W // bs), out.shape
    assert out.dtype == x.dtype
    assert bool(jnp.array_equal(out, ref)), f"mismatch for {(B, C, H, W, bs, str(dtype))}"


if __name__ == "__main__":
    # PixelShuffle has no learnable parameters; only block_size.
    key = jax.random.PRNGKey(0)
    k0, k1, k2 = jax.random.split(key, 3)

    # Primary small test shape (NCHW), matching the module's usage.
    block_size = 2
    x = jax.random.normal(k0, (2, 4, 16, 16), dtype=jnp.float32)
    fn = jax.jit(functools.partial(pixel_shuffle, block_size=block_size))
    out = jax.block_until_ready(fn(x))
    ref = pixel_shuffle_ref(x, block_size)
    assert out.shape == (2, 4 * block_size * block_size, 8, 8), out.shape
    assert out.dtype == x.dtype
    assert bool(jnp.array_equal(out, ref)), "Pallas output mismatch vs reference"

    # Extra coverage flagged in review: awkward C, bs=3, and bf16 (masked-lane paths).
    _check(1, 3, 12, 12, 3, jnp.float32, k1)
    _check(2, 4, 16, 16, 2, jnp.bfloat16, k2)

    print("KERNEL_OK")
</pallas_src>

<mosaic_0001>
module attributes {stable_mosaic.version = 11 : i64} {
  func.func @kernel(%arg0: i32, %arg1: i32, %arg2: memref<2x2x8x8xf32, #tpu.memory_space<vmem>>, %arg3: memref<2x8x16xf32, #tpu.memory_space<vmem>>) attributes {dimension_semantics = [#tpu.dimension_semantics<parallel>, #tpu.dimension_semantics<parallel>], iteration_bounds = array<i64: 8, 1>, scalar_prefetch = 0 : i64, scratch_operands = 0 : i64, tpu.core_type = #tpu.core_type<tc>, window_params = [{transform_indices = @transform_0, window_bounds = array<i64: 2, 2, 8, 8>}, {transform_indices = @transform_1, window_bounds = array<i64: 2, 8, 16>}]} {
    %c0 = arith.constant 0 : index
    %c0_0 = arith.constant 0 : index
    %c0_1 = arith.constant 0 : index
    %c0_2 = arith.constant 0 : index
    %0 = vector.load %arg2[%c0, %c0_0, %c0_1, %c0_2] : memref<2x2x8x8xf32, #tpu.memory_space<vmem>>, vector<2x1x8x8xf32>
    %1 = vector.shape_cast %0 : vector<2x1x8x8xf32> to vector<2x8x8xf32>
    %c0_3 = arith.constant 0 : index
    %c0_4 = arith.constant 0 : index
    %c0_5 = arith.constant 0 : index
    %2 = vector.load %arg3[%c0_3, %c0_4, %c0_5] : memref<2x8x16xf32, #tpu.memory_space<vmem>>, vector<2x8x8xf32>
    tpu.vector_store %arg3[%c0_3, %c0_4, %c0_5], %1 {strides = array<i32>} : memref<2x8x16xf32, #tpu.memory_space<vmem>>, vector<2x8x8xf32>,
    %c0_6 = arith.constant 0 : index
    %c1 = arith.constant 1 : index
    %c0_7 = arith.constant 0 : index
    %c0_8 = arith.constant 0 : index
    %3 = vector.load %arg2[%c0_6, %c1, %c0_7, %c0_8] : memref<2x2x8x8xf32, #tpu.memory_space<vmem>>, vector<2x1x8x8xf32>
    %4 = vector.shape_cast %3 : vector<2x1x8x8xf32> to vector<2x8x8xf32>
    %c0_9 = arith.constant 0 : index
    %c0_10 = arith.constant 0 : index
    %c8 = arith.constant 8 : index
    %5 = vector.load %arg3[%c0_9, %c0_10, %c8] : memref<2x8x16xf32, #tpu.memory_space<vmem>>, vector<2x8x8xf32>
    tpu.vector_store %arg3[%c0_9, %c0_10, %c8], %4 {strides = array<i32>} : memref<2x8x16xf32, #tpu.memory_space<vmem>>, vector<2x8x8xf32>,
    return
  }
  func.func @transform_0(%arg0: i32, %arg1: i32) -> (i32, i32, i32, i32) {
    %c0_i32 = arith.constant 0 : i32
    %c0_i32_0 = arith.constant 0 : i32
    %c0_i32_1 = arith.constant 0 : i32
    return %arg0, %c0_i32, %arg1, %c0_i32_0 : i32, i32, i32, i32
  }
  func.func @transform_1(%arg0: i32, %arg1: i32) -> (i32, i32, i32) {
    %c0_i32 = arith.constant 0 : i32
    %c0_i32_0 = arith.constant 0 : i32
    return %arg0, %arg1, %c0_i32 : i32, i32, i32
  }
}

</mosaic_0001>

<bundles_post_ra>
// kernel: pixel_shuffle.1
= control target key start
LH: loop header
LB: loop body
LE: loop exit
PB: predicated region body
PF: predicated region fallthrough
CT: control target
= control target key end

     0   :  { %6 = vsyncpa [#allocation3], 0  ;;  %s543_s0 = inlined_call_operand.vmem [shape: f32[16,2,8,8], index: 0, kind: input, shape index: {}]   ;;  %s544_s1 = inlined_call_operand.hbm [shape: f32[16,8,16], index: 1, kind: output, shape index: {}]  }
   0x1   :  { %8 = vsyncpa [#allocation3 + $0x1], 0  ;;  %s426_s6 = smov 0   ;;  %s428_s7 = smov 0  }
   0x2   :  { %s430_s8 = smov 0   ;;  %s432_s9 = smov 0  }
   0x3   :  { %s434_s10 = smov 0   ;;  %s436_s11 = smov 0  }
   0x4 LB: > { %s258_s12 = sadd.s32 4294967295, %s411_s11   ;;  %s259_s13 = sadd.s32 4294967294, %s411_s11   ;;  %s411_s11 = sphi %s436_s11, %s14_s11   ;;  %s407_s10 = sphi %s434_s10, %s551_s10   ;;  %s403_s9 = sphi %s432_s9, %s550_s9   ;;  %s399_s8 = sphi %s430_s8, %s549_s8   ;;  %s395_s7 = sphi %s428_s7, %s548_s7   ;;  %s391_s6 = sphi %s426_s6, %s547_s6  }
   0x5   : > { %s26_s14 = sadd.s32 1, %s407_s10  ;;  %s63_s15 = sadd.s32 1, %s399_s8 }
   0x6   : > { %p28_p0 = scmp.ge.s32.totalorder %s26_s14, 8  ;;  %p73_p1 = scmp.ne.s32.totalorder %s399_s8, %s395_s7 }
   0x7   : > { %p74_p2 = scmp.eq.s32.totalorder %s258_s12, 7  ;;  %p79_p3 = scmp.ne.s32.totalorder %s395_s7, %s391_s6 }
   0x8   : > { %s553_s14 = smov (%p28_p0, %s26_s14), 0  ;;  %p80_p5 = scmp.eq.s32.totalorder %s259_s13, 7 }
   0x9   : > { %p466_p4 = por %p74_p2, %p73_p1  ;;  %s58_s17 = ssub.s32 %s407_s10, %s553_s14 }
   0xa   : > { %p262_p6 = scmp.ge.s32.totalorder %s411_s11, 1  ;;  %p61_p7 = scmp.eq.s32.totalorder %s58_s17, 0 }
   0xb   : > { %p473_p8 = por %p80_p5, %p79_p3  ;;  %p111_p9 = scmp.lt.s32.totalorder %s411_s11, 9 }
   0xc   : > { %s479_s19 = scalar_select %p61_p7, %s399_s8, %s63_s15  }
   0xd   : > { %p112_p10 = pnand %p262_p6, %p111_p9 }
   0xe   : > { %s264_s20 = sshll.u32 (!%p112_p10), %s403_s9, 1  ;;  %s132_s21 = sand.u32 (!%p112_p10), 1, %s395_s7   ;;  %vm148_vm0 = vcmask (!%p112_p10), 64512   ;;  %vm162_vm1 = vcmask (!%p112_p10), 130112  }
   0xf   : > { %115 = sbr.rel (%p112_p10) target bundleno = 160 (0xa0), region = 24  ;;  %p136_p11 = scmp.lt.s32.totalorder (!%p112_p10), %s264_s20, 15 }
  0x10   : > { %s263_s22 = sshll.u32 (!%p112_p10), %s132_s21, 4  ;;  %s413_s27 = smov (!%p112_p10), 8  }
  0x11   : > { %s134_s28 = scalar_lea.vmem (!%p112_p10), [#allocation2], %s263_s22  ;;  %s275_s29 = sshll.u32 (!%p112_p10), %s403_s9, 8 }
  0x12   : > { %s180_s30 = sshll.u32 (!%p112_p10), %s134_s28, 4  ;;  %s492_s4 = scalar_lea.hbm (!%p112_p10), %s544_s1, %s275_s29  ;;  %s494_s30 = int_to_ptr.vmem [resolvable:$true] %s180_s30 }
  0x13   : > { %s496_s5 = scalar_lea.sflag (!%p112_p10), [#allocation3], %s132_s21  ;;  %s333_s12 = scalar_lea.vmem (!%p112_p10), %s494_s30, 256 }
  0x14   : > { %p334_p12 = scmp.ne.s32.totalorder (!%p112_p10), %s494_s30, %s333_s12  ;;  %s414_s9 = smov (!%p112_p10), [#allocation2]  }
  0x15   : > { %s337_s13 = sshll.u32 (!%p112_p10), %s414_s9, 4  ;;  %s338_s13 = int_to_ptr.vmem [resolvable:$false] %s337_s13 }
  0x16   : > { %s555_s20 = smov (!%p136_p11, %s264_s20), 15  ;;  %p335_p13 = pnand %p334_p12, %p466_p4 }
  0x17   : > { %s274_s23 = sshll.u32 %s555_s20, 4  ;;  %s339_s15 = scalar_lea.vmem %s338_s13, 512 }
  0x18   : > { %s143_s26 = scalar_lea.vmem %s543_s0, %s274_s23  ;;  %p336_p0 = pneg %p335_p13 }
  0x19   : > { %v267_v0 = vld [vmem:[%s143_s26 + $0x8] sm:$0xff]  ;;  %v146_v1 = vld [vmem:[%s143_s26] sm:$0xff]  ;;  %v147_v2 = vld [vmem:[%s143_s26 + $0x10] sm:$0xff]  ;;  %p340_p1 = scmp.lt.s32.totalorder %s494_s30, %s338_s13  ;;  %p341_p2 = scmp.lt.s32.totalorder %s339_s15, %s333_s12 }
  0x1a   : > { %156 = vrot.lane.b32.xlu0 %v267_v0, %s413_s27  ;;  %149 = vst.msk [vmem:[%s134_s28] sm:$0xff] %vm148_vm0, %v146_v1  ;;  %150 = vst.msk [vmem:[%s134_s28 + $0x8] sm:$0xff] %vm148_vm0, %v147_v2  ;;  %v268_v3 = vld [vmem:[%s143_s26 + $0x18] sm:$0xff] }
  0x1b   : > { %p342_p3 = por %p341_p2, %p340_p1 }
  0x1d   : > { %p343_p5 = pnand %p342_p3, %p336_p0 }
  0x1e   : > { %158 = vrot.lane.b32.xlu0 %v268_v3, %s413_s27 }
  0x8c   : > { %v157_v4 = vpop.permute.xlu0 %156 }
  0x8d   : > { %163 = vst.msk [vmem:[%s134_s28] sm:$0xff] %vm162_vm1, %v157_v4 }
  0x90   : > { %v159_v5 = vpop.permute.xlu0 %158 }
  0x91   : > { %164 = vst.msk [vmem:[%s134_s28 + $0x8] sm:$0xff] %vm162_vm1, %v159_v5 }
  0x92   : > { %346 = shalt.err (!%p343_p5)
}
  0x93   : > { %s347_s17 = scalar_lea.hbm %s492_s4, 256  ;;  %s351_s22 = scalar_lea.hbm %s544_s1, 2048 }
  0x94   : > { %p348_p6 = scmp.ne.s32.totalorder %s492_s4, %s347_s17  ;;  %p352_p10 = scmp.lt.u32.totalorder %s492_s4, %s544_s1 }
  0x95   : > { %p353_p11 = scmp.lt.u32.totalorder %s351_s22, %s347_s17  ;;  %p355_p13 = scmp.lt.u32.totalorder %s347_s17, %s492_s4 }
  0x96   : > { %p349_p7 = pnand %p348_p6, %p466_p4 }
  0x97   : > { %p354_p12 = por %p353_p11, %p352_p10 }
  0x98   : > { %p350_p9 = pneg %p349_p7 }
  0x99   : > { %p356_p0 = por %p355_p13, %p354_p12 }
  0x9b   : > { %p357_p1 = pnand %p356_p0, %p350_p9 }
  0x9d   : > { %360 = shalt.err (!%p357_p1)
}
  0x9e   : > { %s415_s25 = smov 128  }
  0x9f   : > { %276 = dma.vmem_to_hbm [thread:$0]  (%p466_p4), %s494_s30, 256, %s492_s4, %s496_s5, %s415_s25, %s415_s25, %s413_s27  }
  0xa0 PF: > { %p282_p2 = scmp.ge.s32.totalorder %s411_s11, 2  ;;  %s195_s26 = sand.u32 1, %s391_s6  }
  0xa1   : > { %s196_s28 = scalar_lea.sflag [#allocation3], %s195_s26 }
  0xa2   : > { %p279_p3 = pnand %p282_p2, %p473_p8 }
  0xa4   : > { %386 = dma.done.wait (!%p279_p3), %s196_s28, 256  }
  0xa5   : > { %388 = vsyncadd (!%p279_p3), %s196_s28, 4294967040  ;;  %s14_s11 = sadd.s32 1, %s411_s11   ;;  %s547_s6 = smov %s395_s7 }
  0xa6   : > { %p11_p5 = scmp.ge.s32.totalorder %s14_s11, 10   ;;  %s548_s7 = smov %s399_s8 }
  0xa7   : > { %s549_s8 = smov %s479_s19  ;;  %s550_s9 = smov %s407_s10 }
  0xa8   : > { %s551_s10 = smov %s553_s14  ;;  %13 = sbr.rel (!%p11_p5) target bundleno = 4 (0x4), region = 60 }
  0xaf   :  { %201 = vsyncpa [#allocation3], 1 }
  0xb0   :  { %203 = vsyncpa [#allocation3 + $0x1], 1 }

</bundles_post_ra>
